<compile_context>
chip_gen: v7x
topology: tpu7x:2x2x1
jax: 0.10.0
libtpu: 0.0.40
codegen_flags: <defaults>
</compile_context>

<pallas_src>
import jax
import jax.numpy as jnp
from jax import lax
from jax.experimental import pallas as pl
from jax.experimental.pallas import tpu as pltpu


def _image_memory_kernel(x_ref, feat_ref, out_ref):
    # x block is resident (same (B, D) block at every grid step).
    x = x_ref[...].astype(jnp.float32)                       # [B, D]

    # F.normalize(x, dim=1) == x / max(||x||, 1e-12) == x * rsqrt(max(||x||^2, 1e-24)).
    # Tiny (B, D) work per step, fully hidden under the `features` HBM stream.
    # (Deliberately NOT hoisted into a pl.when(j==0) scratch: with
    # dimension_semantics=("parallel",) the second TensorCore's first step is
    # not j==0, so such a scratch would be read uninitialized.)
    sq = jnp.sum(x * x, axis=1, keepdims=True)               # [B, 1]
    x_n = x * lax.rsqrt(jnp.maximum(sq, 1e-24))              # [B, D]

    # Streamed memory-bank tile; do NOT upcast (keeps HBM/VMEM traffic minimal,
    # MXU accumulates in f32 regardless).
    f = feat_ref[...]                                        # [TN, D]

    # outputs_tile = x_n @ f.T  -> NT contraction of both last dims.  Same
    # pattern as flash-attention's q @ k.T over the streamed K tile: the MXU
    # consumes the RHS contraction dim directly, no XLU transpose of the big
    # (TN, D) tile.  HIGHEST precision only for f32 banks (parity with the
    # PyTorch f32 reference); bf16 banks use the native single-pass path.
    prec = (lax.Precision.HIGHEST
            if f.dtype == jnp.float32 else lax.Precision.DEFAULT)
    out = lax.dot_general(
        x_n.astype(f.dtype), f,
        dimension_numbers=(((1,), (1,)), ((), ())),
        preferred_element_type=jnp.float32,
        precision=prec,
    )                                                        # [B, TN]
    out_ref[...] = out.astype(out_ref.dtype)


def _default_vmem_limit_bytes():
    """3/4 of physical VMEM: 48 MiB on v7x (64 MiB/TC), 96 MiB on v5e/v6e."""
    try:
        cap = int(pltpu.get_tpu_info().vmem_capacity_bytes)
    except Exception:
        cap = 64 * 1024 * 1024            # conservative (v7x-sized) fallback
    return int(min((3 * cap) // 4, 96 * 1024 * 1024))


def _auto_tile_n(N, D, B_pad, feat_bytes, x_bytes, vmem_limit_bytes):
    """Largest lane-dense N-tile whose *full* pipelined footprint fits VMEM."""
    # Leave headroom for compiler-internal scratch below the scoped limit.
    budget = int(vmem_limit_bytes * 0.75)
    # Fixed cost: the resident x block (count two buffers, conservatively).
    fixed = 2 * B_pad * D * x_bytes
    # Per-row-of-N cost: double-buffered features tile + double-buffered f32
    # (B_pad, TN) output block.
    per_n = 2 * D * feat_bytes + 2 * B_pad * 4
    tn = max(128, (budget - fixed) // per_n)
    # Beyond ~16 MiB per features tile the HBM-efficiency gain is negligible
    # and grid_n shrinks (hurts megacore sharding on v7x).
    tn = min(tn, max(128, (16 * 1024 * 1024) // (D * feat_bytes)))
    tn = max(128, (tn // 128) * 128)
    # Never larger than the (lane-padded) bank.
    n_pad = ((N + 127) // 128) * 128
    tn = min(tn, n_pad)
    # Prefer >= 8 grid steps (both TensorCores get several steps, pipeline
    # stays primed) as long as that still leaves >= 8 MiB features tiles.
    tn8 = max(128, ((pl.cdiv(N, 8) + 127) // 128) * 128)
    if tn8 * D * feat_bytes >= 8 * 1024 * 1024:
        tn = min(tn, tn8)
    return int(tn)


def image_memory_forward(x, features, targets=None, *, tn=None,
                         vmem_limit_bytes=None):
    """Pallas implementation of ImageMemory.forward (inference path).

    x        : [B, num_features]           (bn_global_x)
    features : [num_samples, num_features] (memory-bank buffer; f32 or bf16 —
               storing the bank as bf16 halves the dominant HBM traffic)
    targets  : unused in forward math (consumed only by CM.backward)
    returns  : (outputs [B, num_samples] f32, features unchanged)
    """
    del targets  # only used by the (training-time) backward bank update
    B, D = x.shape
    N, D2 = features.shape
    assert D == D2

    if vmem_limit_bytes is None:
        vmem_limit_bytes = _default_vmem_limit_bytes()

    feat_bytes = jnp.dtype(features.dtype).itemsize
    x_bytes = jnp.dtype(x.dtype).itemsize

    # Pad batch up to the f32 sublane multiple (8) to avoid masked partial
    # stores on the (B, TN) output block; slice the result back afterwards.
    B_pad = max(8, ((B + 7) // 8) * 8)
    if B_pad != B:
        x = jnp.pad(x, ((0, B_pad - B), (0, 0)))

    if tn is None:
        tn = _auto_tile_n(N, D, B_pad, feat_bytes, x_bytes, vmem_limit_bytes)
    n_pad = ((N + 127) // 128) * 128
    tn = int(min(tn, n_pad))                      # never larger than the bank
    grid_n = pl.cdiv(N, tn)

    cost = pl.CostEstimate(
        flops=2 * B_pad * N * D,
        transcendentals=0,
        bytes_accessed=N * D * feat_bytes + B_pad * D * x_bytes + B_pad * N * 4,
    )

    outputs = pl.pallas_call(
        _image_memory_kernel,
        out_shape=jax.ShapeDtypeStruct((B_pad, N), jnp.float32),
        grid=(grid_n,),
        in_specs=[
            pl.BlockSpec((B_pad, D), lambda j: (0, 0)),   # x: resident
            pl.BlockSpec((tn, D), lambda j: (j, 0)),      # features: streamed tiles
        ],
        out_specs=pl.BlockSpec((B_pad, tn), lambda j: (0, j)),
        compiler_params=pltpu.CompilerParams(
            dimension_semantics=("parallel",),            # v7x: shard N over 2 TCs
            vmem_limit_bytes=int(vmem_limit_bytes),
        ),
        cost_estimate=cost,
    )(x, features)

    if B_pad != B:
        outputs = outputs[:B]

    # CM only mutates `features` in backward(); forward returns it unchanged.
    return outputs, features


def _reference(x, features):
    norm = jnp.sqrt(jnp.sum(x * x, axis=1, keepdims=True))
    x_n = x / jnp.maximum(norm, 1e-12)
    return x_n @ features.astype(jnp.float32).T


if __name__ == "__main__":
    # Small shapes consistent with the module: batch=8, num_features=128,
    # num_samples=256 (memory-bank size).
    B, num_features, num_samples = 8, 128, 256

    key = jax.random.PRNGKey(0)
    kx, kf = jax.random.split(key)

    x = jax.random.normal(kx, (B, num_features), dtype=jnp.float32)
    # register_buffer('features', torch.zeros(...)) -> zeros in __init__; use a
    # deterministic random bank here so the matmul result is non-trivial.
    features = jax.random.normal(kf, (num_samples, num_features), dtype=jnp.float32)
    targets = jnp.arange(B, dtype=jnp.int32) % num_samples   # unused in forward math

    ref = _reference(x, features)

    # 1) Force tn=128 so the test exercises multiple grid steps (N/tn = 2).
    outputs, feats_out = image_memory_forward(x, features, targets, tn=128)
    outputs = jax.block_until_ready(outputs)
    assert outputs.shape == (B, num_samples)
    assert jnp.allclose(outputs, ref, atol=1e-4, rtol=1e-4)
    assert jnp.array_equal(feats_out, features)

    # 2) Auto-chosen tile (single step at this toy size; VMEM-aware heuristic).
    outputs2, _ = image_memory_forward(x, features, targets)
    outputs2 = jax.block_until_ready(outputs2)
    assert jnp.allclose(outputs2, ref, atol=1e-4, rtol=1e-4)

    # 3) bf16 memory bank (recommended storage: halves HBM traffic).  Looser
    #    tolerance: the bank (and x_n) go through the MXU in bf16.
    outputs3, _ = image_memory_forward(x, features.astype(jnp.bfloat16), targets)
    outputs3 = jax.block_until_ready(outputs3)
    assert jnp.allclose(outputs3, ref, atol=1e-1, rtol=2e-2)

    print("KERNEL_OK")
</pallas_src>

<mosaic_0001>
module attributes {stable_mosaic.version = 11 : i64} {
  func.func @_image_memory_kernel(%arg0: i32, %arg1: memref<8x128xf32, #tpu.memory_space<vmem>>, %arg2: memref<128x128xf32, #tpu.memory_space<vmem>>, %arg3: memref<8x128xf32, #tpu.memory_space<vmem>>) attributes {dimension_semantics = [#tpu.dimension_semantics<parallel>], iteration_bounds = array<i64: 2>, scalar_prefetch = 0 : i64, scratch_operands = 0 : i64, tpu.core_type = #tpu.core_type<tc>, window_params = [{pipeline_mode = #tpu.pipeline_mode<synchronous>, transform_indices = @transform_0, window_bounds = array<i64: 8, 128>}, {transform_indices = @transform_1, window_bounds = array<i64: 128, 128>}, {transform_indices = @transform_2, window_bounds = array<i64: 8, 128>}]} {
    %c0 = arith.constant 0 : index
    %c0_0 = arith.constant 0 : index
    %0 = vector.load %arg1[%c0, %c0_0] : memref<8x128xf32, #tpu.memory_space<vmem>>, vector<8x128xf32>
    %1 = arith.mulf %0, %0 : vector<8x128xf32>
    %cst = arith.constant dense<0.000000e+00> : vector<8xf32>
    %2 = vector.multi_reduction <add>, %1, %cst [1] : vector<8x128xf32> to vector<8xf32>
    %3 = vector.shape_cast %2 : vector<8xf32> to vector<8x1xf32>
    %cst_1 = arith.constant 1.000000e-24 : f32
    %4 = vector.broadcast %cst_1 : f32 to vector<8x1xf32>
    %5 = arith.maximumf %3, %4 : vector<8x1xf32>
    %6 = math.rsqrt %5 : vector<8x1xf32>
    %7 = vector.broadcast %6 : vector<8x1xf32> to vector<8x128xf32>
    %8 = arith.mulf %0, %7 : vector<8x128xf32>
    %c0_2 = arith.constant 0 : index
    %c0_3 = arith.constant 0 : index
    %9 = vector.load %arg2[%c0_2, %c0_3] : memref<128x128xf32, #tpu.memory_space<vmem>>, vector<128x128xf32>
    %cst_4 = arith.constant dense<0.000000e+00> : vector<8x128xf32>
    %10 = tpu.matmul %8, %9, %cst_4 {dimension_numbers = #tpu.dot_dimension_numbers<[1], [1], [0], [0], [0, 0, 1, 0], [], []>, precision = #tpu.contract_precision<fp32>} : vector<8x128xf32>, vector<128x128xf32>, vector<8x128xf32> -> vector<8x128xf32>
    %c0_5 = arith.constant 0 : index
    %c0_6 = arith.constant 0 : index
    %11 = vector.load %arg3[%c0_5, %c0_6] : memref<8x128xf32, #tpu.memory_space<vmem>>, vector<8x128xf32>
    tpu.vector_store %arg3[%c0_5, %c0_6], %10 {strides = array<i32>} : memref<8x128xf32, #tpu.memory_space<vmem>>, vector<8x128xf32>,
    return
  }
  func.func @transform_0(%arg0: i32) -> (i32, i32) {
    %c0_i32 = arith.constant 0 : i32
    %c0_i32_0 = arith.constant 0 : i32
    %c0_i32_1 = arith.constant 0 : i32
    return %c0_i32, %c0_i32_0 : i32, i32
  }
  func.func @transform_1(%arg0: i32) -> (i32, i32) {
    %c0_i32 = arith.constant 0 : i32
    %c0_i32_0 = arith.constant 0 : i32
    return %arg0, %c0_i32 : i32, i32
  }
  func.func @transform_2(%arg0: i32) -> (i32, i32) {
    %c0_i32 = arith.constant 0 : i32
    %c0_i32_0 = arith.constant 0 : i32
    return %c0_i32, %arg0 : i32, i32
  }
}

</mosaic_0001>

<bundles_post_ra>
// kernel: tpu_custom_call.1
= control target key start
LH: loop header
LB: loop body
LE: loop exit
PB: predicated region body
PF: predicated region fallthrough
CT: control target
= control target key end

     0   :  { %7 = vsyncpa [#allocation3], 0  ;;  %s2046_s0 = inlined_call_operand.hbm [shape: f32[8,128], index: 0, kind: input, shape index: {}]   ;;  %s2047_s1 = inlined_call_operand.hbm [shape: f32[256,128], index: 1, kind: input, shape index: {}]   ;;  %s2048_s2 = inlined_call_operand.hbm [shape: f32[8,256], index: 2, kind: output, shape index: {}]  }
   0x1   :  { %8 = vsyncpa [#allocation6], 0 }
   0x2   :  { %10 = vsyncpa [#allocation6 + $0x1], 0 }
   0x3   :  { %11 = vsyncpa [#allocation4], 0 }
   0x4   :  { %13 = vsyncpa [#allocation4 + $0x1], 0  ;;  %s1635_s9 = smov 0   ;;  %s1637_s10 = smov 0  }
   0x5   :  { %s1639_s11 = smov 0   ;;  %s1641_s12 = smov 0  }
   0x6 LB: > { %s1656_s13 = sadd.s32 4294967295, %s1610_s12   ;;  %s937_s14 = sadd.s32 4294967294, %s1610_s12   ;;  %s1610_s12 = sphi %s1641_s12, %s2073_s12   ;;  %s1606_s11 = sphi %s1639_s11, %s2072_s11   ;;  %s1602_s10 = sphi %s1637_s10, %s2071_s10   ;;  %s1598_s9 = sphi %s1635_s9, %s2070_s9  }
   0x7   : > { %s1660_s15 = sadd.s32 1, %s1610_s12   ;;  %s47_s16 = sadd.s32 1, %s1606_s11 }
   0x8   : > { %s44_s17 = ssub.s32 %s1610_s12, %s1660_s15  ;;  %p54_p0 = scmp.ne.s32.totalorder %s1606_s11, %s1602_s10 }
   0x9   : > { %p45_p1 = scmp.eq.s32.totalorder %s44_s17, 0  ;;  %p55_p2 = scmp.eq.s32.totalorder %s1610_s12, 0 }
   0xa   : > { %p60_p3 = scmp.ne.s32.totalorder %s1602_s10, %s1598_s9  ;;  %p2049_p4 = scmp.eq.s32.totalorder %s1656_s13, 0 }
   0xb   : > { %s1672_s18 = scalar_select %p45_p1, %s1606_s11, %s47_s16  }
   0xc   : > { %p1674_p5 = por %p55_p2, %p54_p0  ;;  %p1680_p6 = por %p2049_p4, %p60_p3 }
   0xd   : > { %p84_p7 = scmp.eq.s32.totalorder %s1656_s13, 1  ;;  %p90_p8 = scmp.eq.s32.totalorder %s937_s14, 1 }
   0xe   : > { %s2055_s20 = scalar_select %p1680_p6, 1, 0 }
   0xf   : > { %p938_p9 = scmp.ge.s32.totalorder %s1610_s12, 1  ;;  %p97_p10 = scmp.lt.s32.totalorder %s1610_s12, 3 }
  0x10   : > { %p1687_p11 = por %p84_p7, %p54_p0  ;;  %p1691_p12 = por %p90_p8, %p60_p3 }
  0x11   : > { %p1695_p13 = pnand %p938_p9, %p97_p10  ;;  %s1612_s24 = smov [#allocation2]  }
  0x12   : > { %s2056_s21 = scalar_select %p1687_p11, 1, 0 }
  0x13   : > { %s2057_s22 = scalar_select %p1691_p12, 1, 0 }
  0x14   : > { %s2058_s23 = scalar_select %p1695_p13, 1, 0 }
  0x15   : > { %p1426_p2 = pneg %p1695_p13  ;;  %s110_s25 = sshll.u32 %s1612_s24, 4  ;;  %s111_s25 = int_to_ptr.vmem [resolvable:$true] %s110_s25 }
  0x16   : > { %p1439_p4 = scmp.lt.s32.totalorder %s1610_s12, 2  ;;  %p2059_p0 = scmp.eq.s32.totalorder %s1656_s13, 0 }
  0x17   : > { %s121_s27 = sand.u32 1, %s1606_s11   ;;  %s1482_s4 = scalar_lea.hbm %s2046_s0, 128 }
  0x18   : > { %p1705_p7 = pnand %p1426_p2, %p2059_p0  ;;  %p1712_p3 = pnand %p1439_p4, %p1674_p5 }
  0x19   : > { %s941_s29 = sshll.u32 %s121_s27, 7  ;;  %p1483_p8 = scmp.ne.s32.totalorder %s2046_s0, %s1482_s4 }
  0x1a   : > { %s2061_s28 = scalar_select %p1712_p3, 1, 0 }
  0x1b   : > { %p1484_p9 = pneg %p1705_p7  ;;  %p1489_p4 = scmp.lt.u32.totalorder %s1482_s4, %s2046_s0 }
  0x1d   : > { %p1485_p10 = pnand %p1484_p9, %p1483_p8 }
  0x1f   : > { %p1486_p2 = pneg %p1485_p10 }
  0x21   : > { %p1491_p5 = pnand %p1489_p4, %p1486_p2 }
  0x23   : > { %1494 = shalt.err (!%p1491_p5)
}
  0x24   : > { %s1495_s14 = scalar_lea.vmem %s111_s25, 128  ;;  %p1503_p11 = scmp.lt.s32.totalorder %s111_s25, %s111_s25 }
  0x25   : > { %p1496_p0 = scmp.ne.s32.totalorder %s111_s25, %s1495_s14  ;;  %p1504_p6 = scmp.lt.s32.totalorder %s1495_s14, %s1495_s14 }
  0x27   : > { %p1498_p1 = pnand %p1496_p0, %p1484_p9  ;;  %p1505_p13 = por %p1504_p6, %p1503_p11 }
  0x29   : > { %p1499_p12 = pneg %p1498_p1 }
  0x2b   : > { %p1506_p3 = pnand %p1505_p13, %p1499_p12 }
  0x2d   : > { %1509 = shalt.err (!%p1506_p3)
}
  0x2e   : > { %1429 = dma.hbm_to_vmem [thread:$0]  (!%p1705_p7), %s2046_s0, 128, %s111_s25, [#allocation3]  }
  0x2f   : > { %s952_s19 = sshll.u32 %s1610_s12, 11  ;;  %s125_s24 = scalar_lea.vmem [#allocation5], %s941_s29 }
  0x30   : > { %s132_s30 = sshll.u32 %s125_s24, 4  ;;  %s1736_s5 = scalar_lea.hbm %s2047_s1, %s952_s19  ;;  %s1738_s30 = int_to_ptr.vmem [resolvable:$true] %s132_s30 }
  0x31   : > { %s1740_s26 = scalar_lea.sflag [#allocation6], %s121_s27  ;;  %s1510_s6 = scalar_lea.hbm %s1736_s5, 2048 }
  0x32   : > { %p1511_p6 = scmp.ne.s32.totalorder %s1736_s5, %s1510_s6  ;;  %p2062_p11 = scmp.ne.s32.totalorder %s2061_s28, 0 }
  0x33   : > { %s1515_s7 = scalar_lea.hbm %s2047_s1, 4096  ;;  %p1516_p7 = scmp.lt.u32.totalorder %s1736_s5, %s2047_s1 }
  0x34   : > { %p1512_p12 = pneg %p2062_p11  ;;  %p1517_p3 = scmp.lt.u32.totalorder %s1515_s7, %s1510_s6 }
  0x35   : > { %p1519_p9 = scmp.lt.u32.totalorder %s1510_s6, %s1736_s5 }
  0x36   : > { %p1513_p13 = pnand %p1512_p12, %p1511_p6  ;;  %p1518_p8 = por %p1517_p3, %p1516_p7 }
  0x38   : > { %p1514_p1 = pneg %p1513_p13  ;;  %p1520_p10 = por %p1519_p9, %p1518_p8 }
  0x3a   : > { %p1521_p2 = pnand %p1520_p10, %p1514_p1 }
  0x3c   : > { %1524 = shalt.err (!%p1521_p2)
}
  0x3d   : > { %s1525_s27 = scalar_lea.vmem %s1738_s30, 2048  ;;  %s1613_s16 = smov [#allocation5]  }
  0x3e   : > { %p1526_p4 = scmp.ne.s32.totalorder %s1738_s30, %s1525_s27  ;;  %s1530_s17 = sshll.u32 %s1613_s16, 4  ;;  %s1531_s17 = int_to_ptr.vmem [resolvable:$false] %s1530_s17 }
  0x3f   : > { %s1532_s19 = scalar_lea.vmem %s1531_s17, 4096  ;;  %p1533_p6 = scmp.lt.s32.totalorder %s1738_s30, %s1531_s17 }
  0x40   : > { %p1528_p5 = pnand %p1526_p4, %p1512_p12  ;;  %p1534_p13 = scmp.lt.s32.totalorder %s1532_s19, %s1525_s27 }
  0x42   : > { %p1529_p0 = pneg %p1528_p5  ;;  %p1535_p7 = por %p1534_p13, %p1533_p6 }
  0x44   : > { %p1536_p3 = pnand %p1535_p7, %p1529_p0 }
  0x46   : > { %1539 = shalt.err (!%p1536_p3)
}
  0x47   : > { %s1614_s24 = smov 128   ;;  %s1615_s3 = smov 8  }
  0x48   : > { %1433 = dma.hbm_to_vmem [thread:$0]  (!%p2062_p11), %s1736_s5, 2048, %s1738_s30, %s1740_s26, %s1614_s24, %s1614_s24, %s1615_s3  }
  0x49   : > { %p2063_p12 = scmp.ne.s32.totalorder %s2058_s23, 0 }
  0x4a   : > { %p2064_p1 = scmp.eq.s32.totalorder (!%p2063_p12), %s1656_s13, 0 }
  0x4b   : > { %144 = sbr.rel (%p2063_p12) target bundleno = 613 (0x265), region = 28 }
  0x52   : > { %1585 = dma.done.wait (%p2064_p1), [#allocation3], 128   ;;  %p2065_p8 = pmov %p2064_p1 }
  0x53   : > { %s1775_s4 = sand.u32 1, %s1602_s10   ;;  %p2066_p11 = scmp.ne.s32.totalorder %s2055_s20, 0 }
  0x54   : > { %1587 = vsyncadd (%p2065_p8), [#allocation3], 4294967168  ;;  %s946_s6 = sshll.u32 %s1775_s4, 7  ;;  %s151_s25 = scalar_lea.sflag [#allocation6], %s1775_s4 }
  0x55   : > { %s1779_s29 = scalar_lea.vmem [#allocation5], %s946_s6 }
  0x56   : > { %1589 = dma.done.wait (%p2066_p11), %s151_s25, 2048  }
  0x57   : > { %1591 = vsyncadd (%p2066_p11), %s151_s25, 4294965248  ;;  %v1616_v0 = vmov 0.0|0.0   ;;  %v1787_v1 = vld [vmem:[#allocation2] sm:$0xff]  ;;  %v183_v2 = vld [vmem:[%s1779_s29] sm:$0xff]  ;;  %vm1617_vm0 = vmmov 0   ;;  %v1618_v51 = vmov 0.0  }
  0x58   : > { %1337 = vmatprep.subr.bf16.mxu0 %v1616_v0  ;;  %1265 = vmatprep.subr.bf16.mxu1 %v1616_v0  ;;  %v184_v3 = vld [vmem:[%s1779_s29 + $0x8] sm:$0xff]  ;;  %v177_v4 = vmul.f32 %v1787_v1, %v1787_v1  ;;  %v200_v5 = vand.u32 4294901760, %v183_v2  ;;  %v185_v7 = vld [vmem:[%s1779_s29 + $0x10] sm:$0xff]  ;;  %v186_v8 = vld [vmem:[%s1779_s29 + $0x18] sm:$0xff]  ;;  %s947_s20 = sshll.u32 %s1775_s4, 3  ;;  %s949_s23 = sshll.u32 %s1656_s13, 7 }
  0x59   : > { %v203_v6 = vand.u32 4294901760, %v184_v3  ;;  %v187_v9 = vld [vmem:[%s1779_s29 + $0x20] sm:$0xff]  ;;  %v206_v10 = vand.u32 4294901760, %v185_v7  ;;  %v209_v11 = vand.u32 4294901760, %v186_v8  ;;  %v188_v12 = vld [vmem:[%s1779_s29 + $0x28] sm:$0xff]  ;;  %v189_v14 = vld [vmem:[%s1779_s29 + $0x30] sm:$0xff]  ;;  %1192 = vmatprep.mubr.msk.f32.mxu0 %vm1617_vm0, %v1618_v51  ;;  %1087 = vmatprep.mubr.msk.f32.mxu1 %vm1617_vm0, %v1618_v51  ;;  %s2002_s7 = scalar_lea.hbm %s2048_s2, %s949_s23 }
  0x5a   : > { %v212_v13 = vand.u32 4294901760, %v187_v9  ;;  %v190_v15 = vld [vmem:[%s1779_s29 + $0x38] sm:$0xff]  ;;  %178 = vadd.xlane.f32.xlu0 %v177_v4  ;;  %v1801_v17 = vsub.f32 %v183_v2, %v200_v5  ;;  %v215_v19 = vand.u32 4294901760, %v188_v12  ;;  %v191_v20 = vld [vmem:[%s1779_s29 + $0x40] sm:$0xff]  ;;  %v192_v21 = vld [vmem:[%s1779_s29 + $0x48] sm:$0xff]  ;;  %v218_v28 = vand.u32 4294901760, %v189_v14 }
  0x5b   : > { %v1799_v16 = vpack.c.bf16 %v203_v6, %v200_v5  ;;  %v1803_v18 = vsub.f32 %v184_v3, %v203_v6  ;;  %v1807_v22 = vsub.f32 %v185_v7, %v206_v10  ;;  %v1809_v23 = vsub.f32 %v186_v8, %v209_v11  ;;  %v193_v25 = vld [vmem:[%s1779_s29 + $0x50] sm:$0xff]  ;;  %v194_v26 = vld [vmem:[%s1779_s29 + $0x58] sm:$0xff]  ;;  %v195_v42 = vld [vmem:[%s1779_s29 + $0x60] sm:$0xff]  ;;  %s174_s28 = scalar_lea.vmem [#allocation7], %s947_s20  ;;  %s842_s8 = scalar_lea.sflag [#allocation4], %s1775_s4 }
  0x5c   : > { %v1811_v24 = vsub.f32 %v187_v9, %v212_v13  ;;  %v1817_v27 = vsub.f32 %v188_v12, %v215_v19  ;;  %v221_v29 = vand.u32 4294901760, %v190_v15  ;;  %v224_v30 = vand.u32 4294901760, %v191_v20  ;;  %v196_v43 = vld [vmem:[%s1779_s29 + $0x68] sm:$0xff]  ;;  %v197_v46 = vld [vmem:[%s1779_s29 + $0x70] sm:$0xff]  ;;  %v198_v47 = vld [vmem:[%s1779_s29 + $0x78] sm:$0xff]  ;;  %s855_s30 = sshll.u32 %s174_s28, 4  ;;  %s2004_s30 = int_to_ptr.vmem [resolvable:$true] %s855_s30 }
  0x5d   : > { %1339 = vmatpush3.bf16.xpose.msra.mxu0 %v1799_v16  ;;  %1267 = vmatpush3.bf16.xpose.msra.mxu1 %v1799_v16  ;;  %v227_v31 = vand.u32 4294901760, %v192_v21  ;;  %v1821_v32 = vsub.f32 %v189_v14, %v218_v28  ;;  %v230_v34 = vand.u32 4294901760, %v193_v25  ;;  %v233_v35 = vand.u32 4294901760, %v194_v26  ;;  %s1540_s14 = scalar_lea.vmem %s2004_s30, 128  ;;  %p2067_p10 = scmp.ne.s32.totalorder %s2056_s21, 0 }
  0x5e   : > { %1340 = vmatprep.subr.bf16.mxu0 %v1616_v0  ;;  %1268 = vmatprep.subr.bf16.mxu1 %v1616_v0  ;;  %v1823_v33 = vsub.f32 %v190_v15, %v221_v29  ;;  %v1825_v36 = vsub.f32 %v191_v20, %v224_v30  ;;  %v1829_v38 = vpack.c.bf16 %v209_v11, %v206_v10  ;;  %v236_v44 = vand.u32 4294901760, %v195_v42  ;;  %p1541_p9 = scmp.ne.s32.totalorder %s2004_s30, %s1540_s14  ;;  %s1619_s13 = smov [#allocation7]  }
  0x5f   : > { %v1827_v37 = vsub.f32 %v192_v21, %v227_v31  ;;  %v1831_v39 = vsub.f32 %v193_v25, %v230_v34  ;;  %v1833_v40 = vsub.f32 %v194_v26, %v233_v35  ;;  %v1839_v41 = vpack.c.bf16 %v215_v19, %v212_v13  ;;  %s1544_s27 = sshll.u32 %s1619_s13, 4  ;;  %s1545_s27 = int_to_ptr.vmem [resolvable:$false] %s1544_s27 }
  0x60   : > { %v239_v45 = vand.u32 4294901760, %v196_v43  ;;  %v1845_v48 = vsub.f32 %v195_v42, %v236_v44  ;;  %v242_v50 = vand.u32 4294901760, %v197_v46  ;;  %v245_v52 = vand.u32 4294901760, %v198_v47  ;;  %p1542_p2 = pnand %p1541_p9, %p2067_p10  ;;  %s1546_s16 = scalar_lea.vmem %s1545_s27, 256 }
  0x61   : > { %v1861_v55 = vpack.c.bf16 %v221_v29, %v218_v28  ;;  %v1867_v56 = vpack.c.bf16 %v227_v31, %v224_v30  ;;  %v1873_v57 = vpack.c.bf16 %v233_v35, %v230_v34  ;;  %v293_v62 = vand.u32 4294901760, %v1801_v17  ;;  %p1547_p5 = scmp.lt.s32.totalorder %s2004_s30, %s1545_s27  ;;  %p1548_p0 = scmp.lt.s32.totalorder %s1546_s16, %s1540_s14 }
  0x62   : > { %v1847_v49 = vsub.f32 %v196_v43, %v239_v45  ;;  %v1857_v53 = vsub.f32 %v197_v46, %v242_v50  ;;  %v1859_v54 = vsub.f32 %v198_v47, %v245_v52  ;;  %v1879_v58 = vpack.c.bf16 %v239_v45, %v236_v44  ;;  %p1543_p4 = pneg %p1542_p2 }
  0x63   : > { %v1885_v59 = vpack.c.bf16 %v245_v52, %v242_v50  ;;  %v300_v63 = vand.u32 4294901760, %v1803_v18  ;;  %v294_v4 = vsub.f32 %v1801_v17, %v293_v62  ;;  %v307_v11 = vand.u32 4294901760, %v1807_v22  ;;  %p1549_p6 = por %p1548_p0, %p1547_p5 }
  0x64   : > { %v314_v12 = vand.u32 4294901760, %v1809_v23  ;;  %v321_v28 = vand.u32 4294901760, %v1811_v24  ;;  %v328_v29 = vand.u32 4294901760, %v1817_v27  ;;  %v335_v44 = vand.u32 4294901760, %v1821_v32 }
  0x65   : > { %1342 = vmatpush3.bf16.xpose.msra.mxu0 %v1829_v38  ;;  %1270 = vmatpush3.bf16.xpose.msra.mxu1 %v1829_v38  ;;  %v301_v5 = vsub.f32 %v1803_v18, %v300_v63  ;;  %v1362_v8 = vpack.c.bf16 %v300_v63, %v293_v62  ;;  %v295_v9 = vand.u32 4294901760, %v294_v4  ;;  %v308_v15 = vsub.f32 %v1807_v22, %v307_v11  ;;  %p1550_p13 = pnand %p1549_p6, %p1543_p4 }
  0x66   : > { %1343 = vmatprep.subr.bf16.mxu0 %v1616_v0  ;;  %1271 = vmatprep.subr.bf16.mxu1 %v1616_v0  ;;  %v315_v19 = vsub.f32 %v1809_v23, %v314_v12  ;;  %v1365_v21 = vpack.c.bf16 %v314_v12, %v307_v11  ;;  %v322_v31 = vsub.f32 %v1811_v24, %v321_v28  ;;  %v342_v45 = vand.u32 4294901760, %v1823_v33 }
  0x67   : > { %v302_v10 = vand.u32 4294901760, %v301_v5  ;;  %v309_v25 = vand.u32 4294901760, %v308_v15  ;;  %v329_v34 = vsub.f32 %v1817_v27, %v328_v29  ;;  %v1368_v35 = vpack.c.bf16 %v328_v29, %v321_v28 }
  0x68   : > { %v316_v26 = vand.u32 4294901760, %v315_v19  ;;  %v323_v42 = vand.u32 4294901760, %v322_v31  ;;  %v336_v47 = vsub.f32 %v1821_v32, %v335_v44  ;;  %v343_v50 = vsub.f32 %v1823_v33, %v342_v45 }
  0x69   : > { %v1290_v14 = vpack.c.bf16 %v302_v10, %v295_v9  ;;  %v330_v43 = vand.u32 4294901760, %v329_v34  ;;  %v1371_v52 = vpack.c.bf16 %v342_v45, %v335_v44  ;;  %v349_v62 = vand.u32 4294901760, %v1825_v36 }
  0x6a   : > { %v1293_v30 = vpack.c.bf16 %v316_v26, %v309_v25  ;;  %v356_v63 = vand.u32 4294901760, %v1827_v37  ;;  %v363_v10 = vand.u32 4294901760, %v1831_v39  ;;  %v370_v11 = vand.u32 4294901760, %v1833_v40 }
  0x6b   : > { %v1296_v46 = vpack.c.bf16 %v330_v43, %v323_v42  ;;  %v391_v34 = vand.u32 4294901760, %v1857_v53 }
  0x6c   : > { %v357_v4 = vsub.f32 %v1827_v37, %v356_v63  ;;  %v1374_v5 = vpack.c.bf16 %v356_v63, %v349_v62 }
  0x6d   : > { %1345 = vmatpush3.bf16.xpose.msra.mxu0 %v1839_v41  ;;  %1273 = vmatpush3.bf16.xpose.msra.mxu1 %v1839_v41  ;;  %v392_v43 = vsub.f32 %v1857_v53, %v391_v34 }
  0x6e   : > { %1346 = vmatprep.subr.bf16.mxu0 %v1616_v0  ;;  %1274 = vmatprep.subr.bf16.mxu1 %v1616_v0  ;;  %v358_v9 = vand.u32 4294901760, %v357_v4 }
  0x75   : > { %1348 = vmatpush3.bf16.xpose.msra.mxu0 %v1861_v55  ;;  %1276 = vmatpush3.bf16.xpose.msra.mxu1 %v1861_v55 }
  0x76   : > { %1349 = vmatprep.subr.bf16.mxu0 %v1616_v0  ;;  %1277 = vmatprep.subr.bf16.mxu1 %v1616_v0 }
  0x7d   : > { %1351 = vmatpush3.bf16.xpose.msra.mxu0 %v1867_v56  ;;  %1279 = vmatpush3.bf16.xpose.msra.mxu1 %v1867_v56 }
  0x7e   : > { %1352 = vmatprep.subr.bf16.mxu0 %v1616_v0  ;;  %1280 = vmatprep.subr.bf16.mxu1 %v1616_v0 }
  0x85   : > { %1354 = vmatpush3.bf16.xpose.msra.mxu0 %v1873_v57  ;;  %1282 = vmatpush3.bf16.xpose.msra.mxu1 %v1873_v57 }
  0x86   : > { %1355 = vmatprep.subr.bf16.mxu0 %v1616_v0  ;;  %1283 = vmatprep.subr.bf16.mxu1 %v1616_v0 }
  0x8d   : > { %1357 = vmatpush3.bf16.xpose.msra.mxu0 %v1879_v58  ;;  %1285 = vmatpush3.bf16.xpose.msra.mxu1 %v1879_v58 }
  0x8e   : > { %1358 = vmatprep.subr.bf16.mxu0 %v1616_v0  ;;  %1286 = vmatprep.subr.bf16.mxu1 %v1616_v0 }
  0x95   : > { %1360 = vmatpush3.bf16.xpose.msra.mxu0 %v1885_v59  ;;  %1288 = vmatpush3.bf16.xpose.msra.mxu1 %v1885_v59 }
  0x96   : > { %1361 = vmatprep.subr.bf16.mxu0 %v1616_v0  ;;  %1289 = vmatprep.subr.bf16.mxu1 %v1616_v0 }
  0xe7   : > { %v179_v60 = vpop.xlane.xlu0 %178 }
  0xe8   : > { %v180_v61 = vmax.f32 %v179_v60, 1e-24  ;;  %v337_v60 = vand.u32 4294901760, %v336_v47 }
  0xea   : > { %1480 = vrsqrt.f32 %v180_v61  ;;  %v344_v61 = vand.u32 4294901760, %v343_v50 }
  0xf4   : > { %v1481_v2 = vpop.eup %1480 }
  0xf5   : > { %v182_v3 = vmul.f32 %v1481_v2, %v1787_v1  ;;  %v1299_v2 = vpack.c.bf16 %v344_v61, %v337_v60 }
  0xf7   : > { %v1896_v6 = vand.u32 4294901760, %v182_v3 }
  0xf9   : > { %v1899_v7 = vsub.f32 %v182_v3, %v1896_v6  ;;  %v350_v3 = vsub.f32 %v1825_v36, %v349_v62 }
  0xfb   : > { %v282_v13 = vand.u32 4294901760, %v1899_v7 }
  0xfd   : > { %1193 = vmatmul.mubr.f32.vlgmr.msra.gmra.mrb[0].mxu0 %v282_v13  ;;  %v283_v1 = vsub.f32 %v1899_v7, %v282_v13  ;;  %v364_v13 = vsub.f32 %v1831_v39, %v363_v10 }
  0xfe   : > { %1363 = vmatpush3.bf16.xpose.msra.mxu0 %v1362_v8  ;;  %1227 = vmatprep.mubr.msk.f32.mxu0 %vm1617_vm0, %v1618_v51  ;;  %v351_v8 = vand.u32 4294901760, %v350_v3 }
  0xff   : > { %v284_v20 = vand.u32 4294901760, %v283_v1  ;;  %1364 = vmatprep.subr.bf16.mxu0 %v1616_v0  ;;  %v371_v1 = vsub.f32 %v1833_v40, %v370_v11  ;;  %v365_v15 = vand.u32 4294901760, %v364_v13 }
 0x100   : > { %v1302_v12 = vpack.c.bf16 %v358_v9, %v351_v8 }
 0x101   : > { %1088 = vmatmul.mubr.f32.vlgmr.msra.gmra.mrb[0].mxu1 %v284_v20  ;;  %v372_v19 = vand.u32 4294901760, %v371_v1  ;;  %v377_v20 = vand.u32 4294901760, %v1845_v48 }
 0x102   : > { %1291 = vmatpush3.bf16.xpose.msra.mxu1 %v1290_v14  ;;  %1122 = vmatprep.mubr.msk.f32.mxu1 %vm1617_vm0, %v1618_v51  ;;  %v1377_v14 = vpack.c.bf16 %v370_v11, %v363_v10 }
 0x103   : > { %1292 = vmatprep.subr.bf16.mxu1 %v1616_v0  ;;  %v1305_v25 = vpack.c.bf16 %v372_v19, %v365_v15  ;;  %v378_v26 = vsub.f32 %v1845_v48, %v377_v20 }
 0x106   : > { %1366 = vmatpush3.bf16.xpose.msra.mxu0 %v1365_v21  ;;  %v384_v21 = vand.u32 4294901760, %v1847_v49 }
 0x107   : > { %1367 = vmatprep.subr.bf16.mxu0 %v1616_v0 }
 0x108   : > { %v385_v28 = vsub.f32 %v1847_v49, %v384_v21  ;;  %v1380_v29 = vpack.c.bf16 %v384_v21, %v377_v20 }
 0x10a   : > { %1294 = vmatpush3.bf16.xpose.msra.mxu1 %v1293_v30  ;;  %v379_v30 = vand.u32 4294901760, %v378_v26  ;;  %v386_v31 = vand.u32 4294901760, %v385_v28 }
 0x10b   : > { %1295 = vmatprep.subr.bf16.mxu1 %v1616_v0 }
 0x10c   : > { %v1308_v42 = vpack.c.bf16 %v386_v31, %v379_v30 }
 0x10e   : > { %1369 = vmatpush3.bf16.xpose.msra.mxu0 %v1368_v35  ;;  %v398_v35 = vand.u32 4294901760, %v1859_v54 }
 0x10f   : > { %1370 = vmatprep.subr.bf16.mxu0 %v1616_v0 }
 0x110   : > { %v399_v44 = vsub.f32 %v1859_v54, %v398_v35  ;;  %v1383_v45 = vpack.c.bf16 %v398_v35, %v391_v34 }
 0x112   : > { %1297 = vmatpush3.bf16.xpose.msra.mxu1 %v1296_v46  ;;  %v393_v46 = vand.u32 4294901760, %v392_v43  ;;  %v400_v47 = vand.u32 4294901760, %v399_v44 }
 0x113   : > { %1298 = vmatprep.subr.bf16.mxu1 %v1616_v0 }
 0x114   : > { %v1311_v50 = vpack.c.bf16 %v400_v47, %v393_v46 }
 0x116   : > { %1372 = vmatpush3.bf16.xpose.msra.mxu0 %v1371_v52  ;;  %v1314_v52 = vpack.c.bf16 %v1803_v18, %v1801_v17  ;;  %v1320_v17 = vpack.c.bf16 %v1817_v27, %v1811_v24  ;;  %v1323_v18 = vpack.c.bf16 %v1823_v33, %v1821_v32  ;;  %v1332_v24 = vpack.c.bf16 %v1847_v49, %v1845_v48 }
 0x117   : > { %1373 = vmatprep.subr.bf16.mxu0 %v1616_v0  ;;  %v1335_v27 = vpack.c.bf16 %v1859_v54, %v1857_v53 }
 0x11a   : > { %1300 = vmatpush3.bf16.xpose.msra.mxu1 %v1299_v2 }
 0x11b   : > { %1301 = vmatprep.subr.bf16.mxu1 %v1616_v0 }
 0x11e   : > { %1375 = vmatpush3.bf16.xpose.msra.mxu0 %v1374_v5 }
 0x11f   : > { %1376 = vmatprep.subr.bf16.mxu0 %v1616_v0 }
 0x122   : > { %1303 = vmatpush3.bf16.xpose.msra.mxu1 %v1302_v12 }
 0x123   : > { %1304 = vmatprep.subr.bf16.mxu1 %v1616_v0 }
 0x126   : > { %1378 = vmatpush3.bf16.xpose.msra.mxu0 %v1377_v14 }
 0x127   : > { %1379 = vmatprep.subr.bf16.mxu0 %v1616_v0 }
 0x12a   : > { %1306 = vmatpush3.bf16.xpose.msra.mxu1 %v1305_v25 }
 0x12b   : > { %1307 = vmatprep.subr.bf16.mxu1 %v1616_v0 }
 0x12e   : > { %1381 = vmatpush3.bf16.xpose.msra.mxu0 %v1380_v29 }
 0x12f   : > { %1382 = vmatprep.subr.bf16.mxu0 %v1616_v0 }
 0x132   : > { %1309 = vmatpush3.bf16.xpose.msra.mxu1 %v1308_v42 }
 0x133   : > { %1310 = vmatprep.subr.bf16.mxu1 %v1616_v0 }
 0x136   : > { %1384 = vmatpush3.bf16.xpose.msra.mxu0 %v1383_v45 }
 0x137   : > { %1385 = vmatprep.subr.bf16.mxu0 %v1616_v0 }
 0x13a   : > { %1312 = vmatpush3.bf16.xpose.msra.mxu1 %v1311_v50 }
 0x13b   : > { %1313 = vmatprep.subr.bf16.mxu1 %v1616_v0 }
 0x13d   : > { %1228 = vmatmul.mubr.f32.vlgmr.msra.gmra.mrb[0].mxu0 %v1896_v6 }
 0x13e   : > { %1387 = vmatpush3.bf16.xpose.msra.mxu0 %v1799_v16  ;;  %1262 = vmatprep.mubr.msk.f32.mxu0 %vm1617_vm0, %v1618_v51  ;;  %v1317_v16 = vpack.c.bf16 %v1809_v23, %v1807_v22  ;;  %v1326_v22 = vpack.c.bf16 %v1827_v37, %v1825_v36  ;;  %v1329_v23 = vpack.c.bf16 %v1833_v40, %v1831_v39 }
 0x13f   : > { %1388 = vmatprep.subr.bf16.mxu0 %v1616_v0 }
 0x141   : > { %1123 = vmatmul.mubr.f32.vlgmr.msra.gmra.mrb[0].mxu1 %v1896_v6 }
 0x142   : > { %1315 = vmatpush3.bf16.xpose.msra.mxu1 %v1314_v52  ;;  %1157 = vmatprep.mubr.msk.f32.mxu1 %vm1617_vm0, %v1618_v51 }
 0x143   : > { %1316 = vmatprep.subr.bf16.mxu1 %v1616_v0 }
 0x146   : > { %1390 = vmatpush3.bf16.xpose.msra.mxu0 %v1829_v38 }
 0x147   : > { %1391 = vmatprep.subr.bf16.mxu0 %v1616_v0 }
 0x14a   : > { %1318 = vmatpush3.bf16.xpose.msra.mxu1 %v1317_v16 }
 0x14b   : > { %1319 = vmatprep.subr.bf16.mxu1 %v1616_v0 }
 0x14e   : > { %1393 = vmatpush3.bf16.xpose.msra.mxu0 %v1839_v41 }
 0x14f   : > { %1394 = vmatprep.subr.bf16.mxu0 %v1616_v0 }
 0x152   : > { %1321 = vmatpush3.bf16.xpose.msra.mxu1 %v1320_v17 }
 0x153   : > { %1322 = vmatprep.subr.bf16.mxu1 %v1616_v0 }
 0x156   : > { %1396 = vmatpush3.bf16.xpose.msra.mxu0 %v1861_v55 }
 0x157   : > { %1397 = vmatprep.subr.bf16.mxu0 %v1616_v0 }
 0x15a   : > { %1324 = vmatpush3.bf16.xpose.msra.mxu1 %v1323_v18 }
 0x15b   : > { %1325 = vmatprep.subr.bf16.mxu1 %v1616_v0 }
 0x15e   : > { %1399 = vmatpush3.bf16.xpose.msra.mxu0 %v1867_v56 }
 0x15f   : > { %1400 = vmatprep.subr.bf16.mxu0 %v1616_v0 }
 0x162   : > { %1327 = vmatpush3.bf16.xpose.msra.mxu1 %v1326_v22 }
 0x163   : > { %1328 = vmatprep.subr.bf16.mxu1 %v1616_v0 }
 0x166   : > { %1402 = vmatpush3.bf16.xpose.msra.mxu0 %v1873_v57 }
 0x167   : > { %1403 = vmatprep.subr.bf16.mxu0 %v1616_v0 }
 0x16a   : > { %1330 = vmatpush3.bf16.xpose.msra.mxu1 %v1329_v23 }
 0x16b   : > { %1331 = vmatprep.subr.bf16.mxu1 %v1616_v0 }
 0x16e   : > { %1405 = vmatpush3.bf16.xpose.msra.mxu0 %v1879_v58 }
 0x16f   : > { %1406 = vmatprep.subr.bf16.mxu0 %v1616_v0 }
 0x172   : > { %1333 = vmatpush3.bf16.xpose.msra.mxu1 %v1332_v24 }
 0x173   : > { %1334 = vmatprep.subr.bf16.mxu1 %v1616_v0 }
 0x176   : > { %1408 = vmatpush3.bf16.xpose.msra.mxu0 %v1885_v59 }
 0x17a   : > { %1336 = vmatpush3.bf16.xpose.msra.mxu1 %v1335_v27 }
 0x17d   : > { %1263 = vmatmul.mubr.f32.vlgmr.msra.gmra.mrb[0].mxu0 %v1896_v6 }
 0x181   : > { %1158 = vmatmul.mubr.f32.vlgmr.msra.gmra.mrb[0].mxu1 %v1899_v7 }
 0x250   : > { %v836_v32 = vpop.f32.mrb[0].mxu0 }
 0x251   : > { %v1264_v33 = vpop.f32.mrb[1].mxu0 }
 0x254   : > { %v541_v36 = vpop.f32.mrb[0].mxu1 }
 0x255   : > { %v1409_v0 = vadd.f32 %v836_v32, %v541_v36  ;;  %v1159_v37 = vpop.f32.mrb[1].mxu1 }
 0x257   : > { %840 = vst [vmem:[%s174_s28] sm:$0xff] %v1409_v0 }
 0x258   : > { %1553 = shalt.err (!%p1550_p13)
}
 0x259   : > { %s1554_s17 = scalar_lea.hbm %s2002_s7, 128  ;;  %s1558_s3 = scalar_lea.hbm %s2048_s2, 256 }
 0x25a   : > { %p1555_p7 = scmp.ne.s32.totalorder %s2002_s7, %s1554_s17  ;;  %p1559_p1 = scmp.lt.u32.totalorder %s2002_s7, %s2048_s2 }
 0x25b   : > { %p1560_p8 = scmp.lt.u32.totalorder %s1558_s3, %s1554_s17  ;;  %p1562_p9 = scmp.lt.u32.totalorder %s1554_s17, %s2002_s7 }
 0x25c   : > { %p1556_p3 = pnand %p1555_p7, %p2067_p10 }
 0x25d   : > { %p1561_p11 = por %p1560_p8, %p1559_p1 }
 0x25e   : > { %p1557_p12 = pneg %p1556_p3 }
 0x25f   : > { %p1563_p2 = por %p1562_p9, %p1561_p11 }
 0x261   : > { %p1564_p4 = pnand %p1563_p2, %p1557_p12 }
 0x263   : > { %1567 = shalt.err (!%p1564_p4)
}
 0x264   : > { %1424 = dma.vmem_to_hbm [thread:$0]  (%p2067_p10), %s2004_s30, 128, %s2002_s7, %s842_s8  }
 0x265 PF: > { %s867_s25 = sand.u32 1, %s1598_s9   ;;  %p2068_p5 = scmp.ne.s32.totalorder %s2057_s22, 0 }
 0x266   : > { %p2069_p0 = scmp.ge.s32.totalorder %s1610_s12, 2  ;;  %s868_s29 = scalar_lea.sflag [#allocation4], %s867_s25 }
 0x268   : > { %p1435_p6 = pnand %p2069_p0, %p2068_p5 }
 0x26a   : > { %1593 = dma.done.wait (!%p1435_p6), %s868_s29, 128  }
 0x26b   : > { %1595 = vsyncadd (!%p1435_p6), %s868_s29, 4294967168  ;;  %p16_p13 = scmp.ge.s32.totalorder %s1660_s15, 4   ;;  %s2070_s9 = smov %s1602_s10 }
 0x26c   : > { %s2071_s10 = smov %s1606_s11  ;;  %s2072_s11 = smov %s1672_s18 }
 0x26d   : > { %s2073_s12 = smov %s1660_s15  ;;  %18 = sbr.rel (!%p16_p13) target bundleno = 6 (0x6), region = 78 }
 0x274   :  { %873 = vsyncpa [#allocation3], 1 }
 0x275   :  { %875 = vsyncpa [#allocation3 + $0x1], 1 }
 0x276   :  { %876 = vsyncpa [#allocation6], 1 }
 0x277   :  { %878 = vsyncpa [#allocation6 + $0x1], 1 }
 0x278   :  { %879 = vsyncpa [#allocation4], 1 }
 0x279   :  { %881 = vsyncpa [#allocation4 + $0x1], 1 }

</bundles_post_ra>
